<compile_context>
chip_gen: v7x
topology: tpu7x:2x2x1
jax: 0.10.0
libtpu: 0.0.40
codegen_flags: <defaults>
</compile_context>

<pallas_src>
import jax
import jax.numpy as jnp
from jax.experimental import pallas as pl
from jax.experimental.pallas import tpu as pltpu


def linear_kernel(wb_ref, x_ref, o_ref):
    # wb_ref: SMEM (3,)  = [w0, w1, bias]   (grid-invariant scalars)
    # x_ref : VMEM (2, B_tile)              (lane-dense batch tile, transposed x)
    # o_ref : VMEM (1, B_tile)              (lane-dense output tile)
    w0 = wb_ref[0]
    w1 = wb_ref[1]
    b = wb_ref[2]
    # Pure VPU: two scalar*vector multiplies + two adds per vreg.
    o_ref[...] = w0 * x_ref[0:1, :] + w1 * x_ref[1:2, :] + b


def binary_network_forward(x, weight, bias, *, min_pallas_batch=512,
                           max_tile=128 * 1024):
    """x: (B, 2) f32, weight: (1, 2) f32 (PyTorch layout), bias: (1,) f32.

    Returns a (B,) vector, matching `self.linear(x).view(-1)`.
    """
    B, F = x.shape
    assert F == 2, "BinaryNetwork expects in_features == 2"

    x = x.astype(jnp.float32)
    w = weight.astype(jnp.float32).reshape(-1)   # (2,)
    b = bias.astype(jnp.float32).reshape(-1)     # (1,)

    # Tiny-batch fast path: fixed pallas_call overhead dwarfs the work; let XLA fuse.
    if B < min_pallas_batch:
        return (x @ w.reshape(F, 1) + b).reshape(-1)

    LANE = 128
    max_tile = max(LANE, (max_tile // LANE) * LANE)          # multiple of 128
    b_tile = min(pl.cdiv(B, LANE) * LANE, max_tile)          # lane-aligned tile
    b_pad = pl.cdiv(B, b_tile) * b_tile                      # tile-aligned batch
    grid = (b_pad // b_tile,)

    # Relayout: (B, 2) -> (2, B_pad), zero-padded tail (sliced off after the call).
    xt = jnp.zeros((2, b_pad), jnp.float32).at[:, :B].set(x.T)
    wb = jnp.concatenate([w, b])                             # (3,) scalars for SMEM

    out = pl.pallas_call(
        linear_kernel,
        out_shape=jax.ShapeDtypeStruct((1, b_pad), jnp.float32),
        grid_spec=pltpu.PrefetchScalarGridSpec(
            num_scalar_prefetch=0,
            grid=grid,
            in_specs=[
                # weight/bias: whole (3,) array in SMEM, read as scalars.
                pl.BlockSpec(memory_space=pltpu.MemorySpace.SMEM),
                # x tile: full sublane extent (2), 128-lane-dense batch blocks.
                pl.BlockSpec((2, b_tile), lambda i: (0, i)),
            ],
            # Lane-dense, unmasked stores (full 128-wide last dim).
            out_specs=pl.BlockSpec((1, b_tile), lambda i: (0, i)),
        ),
        compiler_params=pltpu.CompilerParams(
            dimension_semantics=("parallel",),   # shard batch tiles across TCs on v7x
        ),
    )(wb, xt)

    # Glue: .view(-1) and drop padded tail.
    return out.reshape(-1)[:B]


if __name__ == "__main__":
    key = jax.random.PRNGKey(0)
    k_x, k_w, k_b = jax.random.split(key, 3)

    F = 2  # nn.Linear(2, 1) -> in_features = 2

    # Deterministic "parameters" (PyTorch-default-like uniform init bound 1/sqrt(F)).
    bound = 1.0 / jnp.sqrt(jnp.float32(F))
    weight = jax.random.uniform(k_w, (1, F), jnp.float32, -bound, bound)  # (out=1, in=2)
    bias = jax.random.uniform(k_b, (1,), jnp.float32, -bound, bound)

    # 1) Kernel path: lane-aligned batch.
    B = 4096
    x = jax.random.normal(k_x, (B, F), jnp.float32)
    y = jax.block_until_ready(binary_network_forward(x, weight, bias))
    y_ref = (x @ weight.T + bias).reshape(-1)
    assert y.shape == (B,)
    assert jnp.allclose(y, y_ref, atol=1e-5, rtol=1e-5)

    # 2) Kernel path: ragged batch + multi-step grid (exercises padding + tiling).
    B2 = 2500
    x2 = jax.random.normal(jax.random.PRNGKey(1), (B2, F), jnp.float32)
    y2 = jax.block_until_ready(
        binary_network_forward(x2, weight, bias, min_pallas_batch=1, max_tile=1024))
    y2_ref = (x2 @ weight.T + bias).reshape(-1)
    assert y2.shape == (B2,)
    assert jnp.allclose(y2, y2_ref, atol=1e-5, rtol=1e-5)

    # 3) Tiny-batch fallback (pure XLA dispatch path).
    x3 = jax.random.normal(jax.random.PRNGKey(2), (8, F), jnp.float32)
    y3 = jax.block_until_ready(binary_network_forward(x3, weight, bias))
    y3_ref = (x3 @ weight.T + bias).reshape(-1)
    assert jnp.allclose(y3, y3_ref, atol=1e-5, rtol=1e-5)

    print("KERNEL_OK")
</pallas_src>

<mosaic_0001>
module attributes {stable_mosaic.version = 11 : i64} {
  func.func @linear_kernel(%arg0: i32, %arg1: memref<3xf32, #tpu.memory_space<smem>>, %arg2: memref<2x4096xf32, #tpu.memory_space<vmem>>, %arg3: memref<1x4096xf32, #tpu.memory_space<vmem>>) attributes {dimension_semantics = [#tpu.dimension_semantics<parallel>], iteration_bounds = array<i64: 1>, scalar_prefetch = 0 : i64, scratch_operands = 0 : i64, tpu.core_type = #tpu.core_type<tc>, window_params = [{transform_indices = @transform_0, window_bounds = array<i64: 3>}, {transform_indices = @transform_1, window_bounds = array<i64: 2, 4096>}, {transform_indices = @transform_2, window_bounds = array<i64: 1, 4096>}]} {
    %c0 = arith.constant 0 : index
    %0 = memref.load %arg1[%c0] : memref<3xf32, #tpu.memory_space<smem>>
    %c1 = arith.constant 1 : index
    %1 = memref.load %arg1[%c1] : memref<3xf32, #tpu.memory_space<smem>>
    %c2 = arith.constant 2 : index
    %2 = memref.load %arg1[%c2] : memref<3xf32, #tpu.memory_space<smem>>
    %c0_0 = arith.constant 0 : index
    %c0_1 = arith.constant 0 : index
    %3 = vector.load %arg2[%c0_0, %c0_1] : memref<2x4096xf32, #tpu.memory_space<vmem>>, vector<1x4096xf32>
    %4 = vector.broadcast %0 : f32 to vector<1x4096xf32>
    %5 = arith.mulf %4, %3 : vector<1x4096xf32>
    %c1_2 = arith.constant 1 : index
    %c0_3 = arith.constant 0 : index
    %6 = vector.load %arg2[%c1_2, %c0_3] : memref<2x4096xf32, #tpu.memory_space<vmem>>, vector<1x4096xf32>
    %7 = vector.broadcast %1 : f32 to vector<1x4096xf32>
    %8 = arith.mulf %7, %6 : vector<1x4096xf32>
    %9 = arith.addf %5, %8 : vector<1x4096xf32>
    %10 = vector.broadcast %2 : f32 to vector<1x4096xf32>
    %11 = arith.addf %9, %10 : vector<1x4096xf32>
    %c0_4 = arith.constant 0 : index
    %c0_5 = arith.constant 0 : index
    %12 = vector.load %arg3[%c0_4, %c0_5] : memref<1x4096xf32, #tpu.memory_space<vmem>>, vector<1x4096xf32>
    tpu.vector_store %arg3[%c0_4, %c0_5], %11 {strides = array<i32>} : memref<1x4096xf32, #tpu.memory_space<vmem>>, vector<1x4096xf32>,
    return
  }
  func.func @transform_0(%arg0: i32) -> i32 {
    %c0_i32 = arith.constant 0 : i32
    %c0_i32_0 = arith.constant 0 : i32
    return %c0_i32 : i32
  }
  func.func @transform_1(%arg0: i32) -> (i32, i32) {
    %c0_i32 = arith.constant 0 : i32
    %c0_i32_0 = arith.constant 0 : i32
    return %c0_i32, %arg0 : i32, i32
  }
  func.func @transform_2(%arg0: i32) -> (i32, i32) {
    %c0_i32 = arith.constant 0 : i32
    %c0_i32_0 = arith.constant 0 : i32
    return %c0_i32, %arg0 : i32, i32
  }
}

</mosaic_0001>

<bundles_post_ra>
// kernel: tpu_custom_call.1
= control target key start
LH: loop header
LB: loop body
LE: loop exit
PB: predicated region body
PF: predicated region fallthrough
CT: control target
= control target key end

     0   :  { %7 = vsyncpa [#allocation5], 0  ;;  %s211_s0 = inlined_call_operand.hbm [shape: f32[3], index: 0, kind: input, shape index: {}]   ;;  %s212_s1 = inlined_call_operand.hbm [shape: f32[2,4096], index: 1, kind: input, shape index: {}]   ;;  %s213_s2 = inlined_call_operand.hbm [shape: f32[1,4096], index: 2, kind: output, shape index: {}]  }
   0x1   :  { %8 = vsyncpa [#allocation3], 0 }
   0x2   :  { %9 = vsyncpa [#allocation4], 0  ;;  %s97_s11 = scalar_lea.hbm %s211_s0, 16 }
   0x3   :  { %p98_p0 = scmp.ne.s32.totalorder %s211_s0, %s97_s11  ;;  %p101_p1 = scmp.lt.u32.totalorder %s97_s11, %s211_s0 }
   0x5   :  { %p103_p2 = pnand %p101_p1, %p98_p0 }
   0x7   :  { %106 = shalt.err (!%p103_p2)
}
   0x8   :  { %s157_s16 = smov [#allocation2]   ;;  %s158_s19 = smov [#allocation6]  }
   0x9   :  { %17 = dma.hbm_to_smem %s211_s0, 16, %s157_s16, [#allocation5]  }
   0xa   :  { %s24_s20 = sshll.u32 %s158_s19, 4  ;;  %s107_s23 = scalar_lea.hbm %s212_s1, 1024  ;;  %s25_s20 = int_to_ptr.vmem [resolvable:$true] %s24_s20 }
   0xb   :  { %p108_p3 = scmp.ne.s32.totalorder %s212_s1, %s107_s23  ;;  %p111_p4 = scmp.lt.u32.totalorder %s107_s23, %s212_s1 }
   0xd   :  { %p113_p5 = pnand %p111_p4, %p108_p3 }
   0xf   :  { %116 = shalt.err (!%p113_p5)
}
  0x10   :  { %s117_s28 = scalar_lea.vmem %s25_s20, 1024  ;;  %p122_p7 = scmp.lt.s32.totalorder %s25_s20, %s25_s20 }
  0x11   :  { %p118_p6 = scmp.ne.s32.totalorder %s25_s20, %s117_s28  ;;  %p123_p8 = scmp.lt.s32.totalorder %s117_s28, %s117_s28 }
  0x13   :  { %p124_p9 = por %p123_p8, %p122_p7 }
  0x15   :  { %p125_p10 = pnand %p124_p9, %p118_p6 }
  0x17   :  { %128 = shalt.err (!%p125_p10)
}
  0x18   :  { %27 = dma.hbm_to_vmem [thread:$0]  %s212_s1, 1024, %s25_s20, [#allocation3]  }
  0x19   :  { %151 = dma.done.wait [#allocation5], 16  }
  0x1a   :  { %152 = vsyncadd [#allocation5], 4294967280 }
  0x1b   :  { %153 = dma.done.wait [#allocation3], 1024  }
  0x1c   :  { %154 = vsyncadd [#allocation3], 4294966272 }
  0x1d   :  { %34 = sfence }
  0x1e   :  { %s35_s30 = sld [smem:[#allocation2]]  ;;  %s92_s3 = sld [smem:[#allocation2 + $0x1]]  ;;  %v38_v0 = vld [vmem:[#allocation6] ss:$2 sm:$0xff]  ;;  %v51_v1 = vld [vmem:[#allocation6 + $0x1] ss:$2 sm:$0xff] }
  0x1f   :  { %s93_s4 = sld [smem:[#allocation2 + $0x2]]  ;;  %v40_v2 = vld [vmem:[#allocation6 + $0x10] ss:$2 sm:$0xff]  ;;  %v53_v3 = vld [vmem:[#allocation6 + $0x11] ss:$2 sm:$0xff]  ;;  %s159_s1 = smov [#allocation7]  }
  0x20   :  { %v42_v4 = vld [vmem:[#allocation6 + $0x20] ss:$2 sm:$0xff]  ;;  %v55_v5 = vld [vmem:[#allocation6 + $0x21] ss:$2 sm:$0xff]  ;;  %v44_v6 = vld [vmem:[#allocation6 + $0x30] ss:$2 sm:$0xff] }
  0x21   :  { %v57_v9 = vld [vmem:[#allocation6 + $0x31] ss:$2 sm:$0xff]  ;;  %s82_s5 = sshll.u32 %s159_s1, 4  ;;  %s83_s5 = int_to_ptr.vmem [resolvable:$true] %s82_s5 }
  0x22   :  { %s129_s6 = scalar_lea.vmem %s83_s5, 512  ;;  %p134_p12 = scmp.lt.s32.totalorder %s83_s5, %s83_s5 }
  0x23   :  { %p130_p11 = scmp.ne.s32.totalorder %s83_s5, %s129_s6  ;;  %p135_p13 = scmp.lt.s32.totalorder %s129_s6, %s129_s6 }
  0x24   :  { %v45_v7 = vstv %s35_s30  ;;  %v58_v8 = vstv %s92_s3 }
  0x25   :  { %v46_v10 = vmul.f32 %v45_v7, %v38_v0  ;;  %v59_v11 = vmul.f32 %v58_v8, %v51_v1  ;;  %v67_v12 = vstv %s93_s4  ;;  %v47_v13 = vmul.f32 %v45_v7, %v40_v2  ;;  %p136_p0 = por %p135_p13, %p134_p12 }
  0x26   :  { %v60_v14 = vmul.f32 %v58_v8, %v53_v3  ;;  %v48_v15 = vmul.f32 %v45_v7, %v42_v4  ;;  %v61_v16 = vmul.f32 %v58_v8, %v55_v5  ;;  %v49_v17 = vmul.f32 %v45_v7, %v44_v6 }
  0x27   :  { %v63_v18 = vadd.f32 %v59_v11, %v46_v10  ;;  %v62_v19 = vmul.f32 %v58_v8, %v57_v9  ;;  %p137_p1 = pnand %p136_p0, %p130_p11 }
  0x28   :  { %v64_v20 = vadd.f32 %v60_v14, %v47_v13  ;;  %v65_v21 = vadd.f32 %v61_v16, %v48_v15 }
  0x29   :  { %v68_v22 = vadd.f32 %v67_v12, %v63_v18  ;;  %v66_v23 = vadd.f32 %v62_v19, %v49_v17 }
  0x2a   :  { %v69_v24 = vadd.f32 %v67_v12, %v64_v20  ;;  %v70_v25 = vadd.f32 %v67_v12, %v65_v21 }
  0x2b   :  { %72 = vst [vmem:[#allocation7] sm:$0xff] %v68_v22  ;;  %v71_v26 = vadd.f32 %v67_v12, %v66_v23 }
  0x2c   :  { %73 = vst [vmem:[#allocation7 + $0x8] sm:$0xff] %v69_v24  ;;  %74 = vst [vmem:[#allocation7 + $0x10] sm:$0xff] %v70_v25 }
  0x2d   :  { %75 = vst [vmem:[#allocation7 + $0x18] sm:$0xff] %v71_v26 }
  0x2e   :  { %140 = shalt.err (!%p137_p1)
}
  0x2f   :  { %s141_s9 = scalar_lea.hbm %s213_s2, 512 }
  0x30   :  { %p142_p2 = scmp.ne.s32.totalorder %s213_s2, %s141_s9  ;;  %p145_p3 = scmp.lt.u32.totalorder %s141_s9, %s213_s2 }
  0x32   :  { %p147_p4 = pnand %p145_p3, %p142_p2 }
  0x34   :  { %150 = shalt.err (!%p147_p4)
}
  0x35   :  { %85 = dma.vmem_to_hbm [thread:$0]  %s83_s5, 512, %s213_s2, [#allocation4]  }
  0x36   :  { %155 = dma.done.wait [#allocation4], 512  }
  0x37   :  { %156 = vsyncadd [#allocation4], 4294966784 }
  0x38   :  { %89 = vsyncpa [#allocation3], 1 }
  0x39   :  { %90 = vsyncpa [#allocation4], 1 }
  0x3a   :  { %91 = vsyncpa [#allocation5], 1 }

</bundles_post_ra>
